<compile_context>
chip_gen: v7x
topology: tpu7x:2x2x1
jax: 0.10.0
libtpu: 0.0.40
codegen_flags: <defaults>
</compile_context>

<pallas_src>
import functools

import jax
import jax.numpy as jnp
from jax.experimental import pallas as pl
from jax.experimental.pallas import tpu as pltpu


_NEG_INF = -1.0e9


def _vmem_capacity_bytes():
    """Physical per-core VMEM; conservative 64 MiB (v7x) fallback if unknown."""
    try:
        return int(pltpu.get_tpu_info().vmem_capacity_bytes)
    except Exception:
        return 64 * 1024 * 1024


def _round_up(x, m):
    return ((x + m - 1) // m) * m


def _choose_seq_chunk(S, tb, d_pad, act_budget=4 * 1024 * 1024):
    """Largest S sub-chunk (multiple of 8, or S itself) whose fc activation fits."""
    cands = sorted({c for c in range(8, S + 1, 8) if S % c == 0} | {S}, reverse=True)
    for c in cands:
        if tb * c * d_pad * 4 <= act_budget:
            return c
    return min(cands)


def _choose_batch_tile(B, S, H, d_pad, x_bytes, n_x_buf, budget):
    """VMEM-aware batch tile: largest legal TB whose per-step footprint fits."""
    # Legal tiles: divisors of B that are multiples of 8 (sublane rule for the
    # (TB, S)/(TB, H) blocks), plus B itself (full-dim blocks are always legal).
    cands = sorted({t for t in range(8, B + 1, 8) if B % t == 0} | {B}, reverse=True)

    def footprint(tb):
        sc = _choose_seq_chunk(S, tb, d_pad)
        x_buf = n_x_buf * tb * S * H * x_bytes                 # pipelined x blocks
        mask_buf = 2 * tb * S * 4                              # additive mask bias
        out_buf = 2 * tb * H * 4                               # output blocks
        weights = (H * d_pad + H * H) * x_bytes + (2 * d_pad + H) * 4  # single-buffered
        live = tb * sc * d_pad * 4 + 4 * tb * S * 4 + 2 * tb * H * 4   # f32 intermediates
        return x_buf + mask_buf + out_buf + weights + live

    feasible = [t for t in cands if footprint(t) <= budget]
    if not feasible:
        return min(cands)
    # Prefer >= 2 grid steps: pipelines the x DMA and lets ("parallel",) shard
    # the batch across v7x's two TensorCores.  Only possible once B >= 16.
    multi = [t for t in feasible if t < B]
    if multi:
        return max(multi)
    return max(feasible)


def _att_flatten_kernel(x_ref, bias_ref, w1_ref, b1_ref, w2_ref, wm_ref, bm_ref,
                        out_ref, logits_ref, *, seq_chunk):
    TB, S, H = x_ref.shape
    Dp = w1_ref.shape[1]

    x = x_ref[...]                                   # (TB, S, H)  bf16 or f32
    w1 = w1_ref[...]                                 # (H, Dp)
    b1 = b1_ref[...]                                 # (1, Dp) f32
    w2 = w2_ref[...]                                 # (1, Dp) f32

    # ---- fc + attention score, fused over S chunks (no full (TB*S, Dp) live) ----
    for c0 in range(0, S, seq_chunk):
        xc = x[:, c0:c0 + seq_chunk, :].reshape(TB * seq_chunk, H)
        h = jnp.dot(xc, w1, preferred_element_type=jnp.float32) + b1
        h = jnp.maximum(h, 0.0)                      # (TB*SC, Dp) f32
        # score = h @ w2 with N == 1: VPU multiply + lane reduce instead of an
        # N=1 matmul.  The mlp output bias b2 is a uniform logit shift and
        # cancels in softmax, so it is dropped.
        logits_ref[:, c0:c0 + seq_chunk] = jnp.sum(
            h.reshape(TB, seq_chunk, Dp) * w2, axis=-1)

    # ---- masked softmax over S (additive 0 / -1e9 bias, lane-axis reductions) ----
    logits = logits_ref[...] + bias_ref[...]         # (TB, S)
    m = jnp.max(logits, axis=-1, keepdims=True)
    e = jnp.exp(logits - m)
    denom = jnp.sum(e, axis=-1, keepdims=True)
    att = e * pl.reciprocal(denom)                   # exact reciprocal (EUP, ~free)

    # ---- attention-weighted pooling over S (flat_glimpses == 1) ----
    x_atted = jnp.sum(att[:, :, None] * x, axis=1)   # (TB, H) f32

    # ---- linear_merge: (TB, H) @ (H, H) GEMM + bias ----
    out_ref[...] = (jnp.dot(x_atted.astype(wm_ref.dtype), wm_ref[...],
                            preferred_element_type=jnp.float32) + bm_ref[...])


def att_flatten(x, x_mask_bool, params, *, use_bf16=True):
    """x: (B, S, H) f32; x_mask_bool: (B, 1, 1, S) bool (True == masked).

    Returns (B, H) f32.
    """
    B, S, H = x.shape
    w1, b1, w2, b2, wm, bm = params
    del b2  # uniform logit shift: cancels exactly in softmax
    D = w1.shape[1]

    vmem_cap = _vmem_capacity_bytes()

    # 128-lane padding of the fc output dim: zero columns are exact
    # (relu(0 + 0) == 0 and the padded score weight is 0) and make both the
    # fc GEMM and the score reduce lane-dense.  H is left unpadded to avoid
    # amplifying the x DMA for small H.
    Dp = max(128, _round_up(D, 128))

    compute_dtype = jnp.bfloat16 if use_bf16 else jnp.float32
    x_bytes = 2 if use_bf16 else 4

    # Big-VMEM chips (v5e/v6e, 128 MiB) get a 3-deep x pipeline (cheap insurance
    # against exposed DMA on v5e's slower HBM); v7x (64 MiB) keeps the default 2.
    want_x_buf = 3 if vmem_cap >= 96 * 1024 * 1024 else 2

    tile_budget = int(vmem_cap * 0.60)               # headroom for compiler scratch
    TB = _choose_batch_tile(B, S, H, Dp, x_bytes, want_x_buf, tile_budget)
    assert B % TB == 0
    grid_steps = B // TB
    n_x_buf = max(2, min(want_x_buf, grid_steps))
    vmem_limit = min(int(vmem_cap * 0.85), 128 * 1024 * 1024)

    # ---- wrapper-side layout / dtype plumbing ----
    x_c = x.astype(compute_dtype)
    mask_bias = jnp.where(x_mask_bool.reshape(B, S), _NEG_INF, 0.0).astype(jnp.float32)
    w1p = jnp.zeros((H, Dp), compute_dtype).at[:, :D].set(w1.astype(compute_dtype))
    b1p = jnp.zeros((1, Dp), jnp.float32).at[:, :D].set(b1.reshape(1, D).astype(jnp.float32))
    w2p = jnp.zeros((1, Dp), jnp.float32).at[:, :D].set(w2.reshape(1, D).astype(jnp.float32))
    wm_c = wm.astype(compute_dtype)
    bm_2d = bm.reshape(1, H).astype(jnp.float32)

    seq_chunk = _choose_seq_chunk(S, TB, Dp)
    kernel = functools.partial(_att_flatten_kernel, seq_chunk=seq_chunk)

    def run(with_buffer_hints):
        def spec(shape, index_map, buffers=None):
            if with_buffer_hints and buffers is not None:
                return pl.BlockSpec(shape, index_map, pipeline_mode=pl.Buffered(buffers))
            return pl.BlockSpec(shape, index_map)

        grid_spec = pltpu.PrefetchScalarGridSpec(
            num_scalar_prefetch=0,
            grid=(grid_steps,),
            in_specs=[
                spec((TB, S, H), lambda b: (b, 0, 0), n_x_buf),  # x
                spec((TB, S), lambda b: (b, 0)),                 # additive mask bias
                spec((H, Dp), lambda b: (0, 0), 1),              # W1 (in, out), D-padded
                spec((1, Dp), lambda b: (0, 0), 1),              # b1, D-padded
                spec((1, Dp), lambda b: (0, 0), 1),              # w2 row, D-padded
                spec((H, H), lambda b: (0, 0), 1),               # Wm (in, out)
                spec((1, H), lambda b: (0, 0), 1),               # bm
            ],
            out_specs=pl.BlockSpec((TB, H), lambda b: (b, 0)),
            scratch_shapes=[pltpu.VMEM((TB, S), jnp.float32)],   # attention logits
        )
        return pl.pallas_call(
            kernel,
            out_shape=jax.ShapeDtypeStruct((B, H), jnp.float32),
            grid_spec=grid_spec,
            compiler_params=pltpu.CompilerParams(
                dimension_semantics=("parallel",),
                vmem_limit_bytes=vmem_limit),
        )(x_c, mask_bias, w1p, b1p, w2p, wm_c, bm_2d)

    try:
        return run(with_buffer_hints=True)
    except Exception:
        # Fallback for jax versions without BlockSpec(pipeline_mode=...).
        return run(with_buffer_hints=False)


def init_params(key, hidden_size, d_inner):
    """Deterministic parameter init; Linear weights stored as (in, out)."""
    ks = jax.random.split(key, 6)

    def lin(kw, kb, fan_in, fan_out):
        bound = 1.0 / jnp.sqrt(fan_in)
        w = jax.random.uniform(kw, (fan_in, fan_out), jnp.float32, -bound, bound)
        b = jax.random.uniform(kb, (fan_out,), jnp.float32, -bound, bound)
        return w, b

    w1, b1 = lin(ks[0], ks[1], hidden_size, d_inner)      # mlp.fc.linear
    w2, b2 = lin(ks[2], ks[3], d_inner, 1)                # mlp.linear
    wm, bm = lin(ks[4], ks[5], hidden_size, hidden_size)  # linear_merge
    return (w1, b1, w2, b2, wm, bm)


def reference(x, x_mask_bool, params):
    """Pure-JAX reference of the PyTorch forward (eval mode)."""
    w1, b1, w2, b2, wm, bm = params
    B, S, H = x.shape
    h = jnp.maximum(x @ w1 + b1, 0.0)
    att = h @ w2 + b2                                     # (B, S, 1)
    mask = x_mask_bool.reshape(B, S, 1)
    att = jnp.where(mask, _NEG_INF, att)
    att = jax.nn.softmax(att, axis=1)
    x_atted = jnp.sum(att * x, axis=1)                    # (B, H)
    return x_atted @ wm + bm


if __name__ == "__main__":
    hidden_size, d_inner = 32, 64
    B, S = 2, 8

    key = jax.random.PRNGKey(0)
    kx, kp = jax.random.split(key)
    x = jax.random.normal(kx, (B, S, hidden_size), jnp.float32)
    # mask: last two positions of each sequence are padding (True == masked)
    x_mask = jnp.arange(S)[None, None, None, :] >= (S - 2)
    x_mask = jnp.broadcast_to(x_mask, (B, 1, 1, S))

    params = init_params(kp, hidden_size, d_inner)
    ref = reference(x, x_mask, params)

    # f32 path: near-exact parity with the PyTorch forward.
    out_f32 = jax.block_until_ready(att_flatten(x, x_mask, params, use_bf16=False))
    assert out_f32.shape == (B, hidden_size)
    assert jnp.allclose(out_f32, ref, atol=1e-3, rtol=1e-3), (
        f"f32 max abs err {jnp.max(jnp.abs(out_f32 - ref))}")

    # bf16 MXU path (default): f32 accumulation, looser tolerance from bf16 inputs.
    out_bf16 = jax.block_until_ready(att_flatten(x, x_mask, params, use_bf16=True))
    assert out_bf16.shape == (B, hidden_size)
    assert jnp.allclose(out_bf16, ref, atol=3e-2, rtol=3e-2), (
        f"bf16 max abs err {jnp.max(jnp.abs(out_bf16 - ref))}")

    print("KERNEL_OK")
</pallas_src>

<mosaic_0001>
module attributes {stable_mosaic.version = 11 : i64} {
  func.func @_att_flatten_kernel(%arg0: i32, %arg1: memref<2x8x32xf32, #tpu.memory_space<vmem>>, %arg2: memref<2x8xf32, #tpu.memory_space<vmem>>, %arg3: memref<32x128xf32, #tpu.memory_space<vmem>>, %arg4: memref<1x128xf32, #tpu.memory_space<vmem>>, %arg5: memref<1x128xf32, #tpu.memory_space<vmem>>, %arg6: memref<32x32xf32, #tpu.memory_space<vmem>>, %arg7: memref<1x32xf32, #tpu.memory_space<vmem>>, %arg8: memref<2x32xf32, #tpu.memory_space<vmem>>, %arg9: memref<2x8xf32, #tpu.memory_space<vmem>>) attributes {dimension_semantics = [#tpu.dimension_semantics<parallel>], iteration_bounds = array<i64: 1>, scalar_prefetch = 0 : i64, scratch_operands = 1 : i64, tpu.core_type = #tpu.core_type<tc>, window_params = [{pipeline_mode = #tpu.pipeline_mode<double_buffered>, transform_indices = @transform_0, window_bounds = array<i64: 2, 8, 32>}, {transform_indices = @transform_1, window_bounds = array<i64: 2, 8>}, {pipeline_mode = #tpu.pipeline_mode<synchronous>, transform_indices = @transform_2, window_bounds = array<i64: 32, 128>}, {pipeline_mode = #tpu.pipeline_mode<synchronous>, transform_indices = @transform_3, window_bounds = array<i64: 1, 128>}, {pipeline_mode = #tpu.pipeline_mode<synchronous>, transform_indices = @transform_4, window_bounds = array<i64: 1, 128>}, {pipeline_mode = #tpu.pipeline_mode<synchronous>, transform_indices = @transform_5, window_bounds = array<i64: 32, 32>}, {pipeline_mode = #tpu.pipeline_mode<synchronous>, transform_indices = @transform_6, window_bounds = array<i64: 1, 32>}, {transform_indices = @transform_7, window_bounds = array<i64: 2, 32>}]} {
    %c0 = arith.constant 0 : index
    %c0_0 = arith.constant 0 : index
    %c0_1 = arith.constant 0 : index
    %0 = vector.load %arg1[%c0, %c0_0, %c0_1] : memref<2x8x32xf32, #tpu.memory_space<vmem>>, vector<2x8x32xf32>
    %c0_2 = arith.constant 0 : index
    %c0_3 = arith.constant 0 : index
    %1 = vector.load %arg3[%c0_2, %c0_3] : memref<32x128xf32, #tpu.memory_space<vmem>>, vector<32x128xf32>
    %c0_4 = arith.constant 0 : index
    %c0_5 = arith.constant 0 : index
    %2 = vector.load %arg4[%c0_4, %c0_5] : memref<1x128xf32, #tpu.memory_space<vmem>>, vector<1x128xf32>
    %c0_6 = arith.constant 0 : index
    %c0_7 = arith.constant 0 : index
    %3 = vector.load %arg5[%c0_6, %c0_7] : memref<1x128xf32, #tpu.memory_space<vmem>>, vector<1x128xf32>
    %4 = vector.shape_cast %0 : vector<2x8x32xf32> to vector<16x32xf32>
    %cst = arith.constant dense<0.000000e+00> : vector<16x128xf32>
    %5 = tpu.matmul %4, %1, %cst {dimension_numbers = #tpu.dot_dimension_numbers<[1], [0], [0], [1], [0, 0, 1, 1], [], []>} : vector<16x32xf32>, vector<32x128xf32>, vector<16x128xf32> -> vector<16x128xf32>
    %6 = vector.broadcast %2 : vector<1x128xf32> to vector<16x128xf32>
    %7 = arith.addf %5, %6 : vector<16x128xf32>
    %cst_8 = arith.constant 0.000000e+00 : f32
    %8 = vector.broadcast %cst_8 : f32 to vector<16x128xf32>
    %9 = arith.maximumf %7, %8 : vector<16x128xf32>
    %10 = vector.shape_cast %9 : vector<16x128xf32> to vector<2x8x128xf32>
    %11 = vector.shape_cast %3 : vector<1x128xf32> to vector<1x1x128xf32>
    %12 = vector.broadcast %11 : vector<1x1x128xf32> to vector<2x8x128xf32>
    %13 = arith.mulf %10, %12 : vector<2x8x128xf32>
    %cst_9 = arith.constant dense<0.000000e+00> : vector<2x8xf32>
    %14 = vector.multi_reduction <add>, %13, %cst_9 [2] : vector<2x8x128xf32> to vector<2x8xf32>
    %c0_10 = arith.constant 0 : index
    %c0_11 = arith.constant 0 : index
    %15 = vector.load %arg9[%c0_10, %c0_11] : memref<2x8xf32, #tpu.memory_space<vmem>>, vector<2x8xf32>
    tpu.vector_store %arg9[%c0_10, %c0_11], %14 {strides = array<i32>} : memref<2x8xf32, #tpu.memory_space<vmem>>, vector<2x8xf32>,
    %c0_12 = arith.constant 0 : index
    %c0_13 = arith.constant 0 : index
    %16 = vector.load %arg9[%c0_12, %c0_13] : memref<2x8xf32, #tpu.memory_space<vmem>>, vector<2x8xf32>
    %c0_14 = arith.constant 0 : index
    %c0_15 = arith.constant 0 : index
    %17 = vector.load %arg2[%c0_14, %c0_15] : memref<2x8xf32, #tpu.memory_space<vmem>>, vector<2x8xf32>
    %18 = arith.addf %16, %17 : vector<2x8xf32>
    %cst_16 = arith.constant dense<0xFF800000> : vector<2xf32>
    %19 = vector.multi_reduction <maximumf>, %18, %cst_16 [1] : vector<2x8xf32> to vector<2xf32>
    %20 = vector.shape_cast %19 : vector<2xf32> to vector<2x1xf32>
    %21 = vector.broadcast %20 : vector<2x1xf32> to vector<2x8xf32>
    %22 = arith.subf %18, %21 : vector<2x8xf32>
    %23 = math.exp %22 : vector<2x8xf32>
    %cst_17 = arith.constant dense<0.000000e+00> : vector<2xf32>
    %24 = vector.multi_reduction <add>, %23, %cst_17 [1] : vector<2x8xf32> to vector<2xf32>
    %25 = vector.shape_cast %24 : vector<2xf32> to vector<2x1xf32>
    %26 = tpu.reciprocal %25 : vector<2x1xf32> -> vector<2x1xf32>
    %27 = vector.broadcast %26 : vector<2x1xf32> to vector<2x8xf32>
    %28 = arith.mulf %23, %27 : vector<2x8xf32>
    %29 = vector.shape_cast %28 : vector<2x8xf32> to vector<2x8x1xf32>
    %30 = vector.broadcast %29 : vector<2x8x1xf32> to vector<2x8x32xf32>
    %31 = arith.mulf %30, %0 : vector<2x8x32xf32>
    %cst_18 = arith.constant dense<0.000000e+00> : vector<2x32xf32>
    %32 = vector.multi_reduction <add>, %31, %cst_18 [1] : vector<2x8x32xf32> to vector<2x32xf32>
    %c0_19 = arith.constant 0 : index
    %c0_20 = arith.constant 0 : index
    %33 = vector.load %arg6[%c0_19, %c0_20] : memref<32x32xf32, #tpu.memory_space<vmem>>, vector<32x32xf32>
    %cst_21 = arith.constant dense<0.000000e+00> : vector<2x32xf32>
    %34 = tpu.matmul %32, %33, %cst_21 {dimension_numbers = #tpu.dot_dimension_numbers<[1], [0], [0], [1], [0, 0, 1, 1], [], []>} : vector<2x32xf32>, vector<32x32xf32>, vector<2x32xf32> -> vector<2x32xf32>
    %c0_22 = arith.constant 0 : index
    %c0_23 = arith.constant 0 : index
    %35 = vector.load %arg7[%c0_22, %c0_23] : memref<1x32xf32, #tpu.memory_space<vmem>>, vector<1x32xf32>
    %36 = vector.broadcast %35 : vector<1x32xf32> to vector<2x32xf32>
    %37 = arith.addf %34, %36 : vector<2x32xf32>
    %c0_24 = arith.constant 0 : index
    %c0_25 = arith.constant 0 : index
    %38 = vector.load %arg8[%c0_24, %c0_25] : memref<2x32xf32, #tpu.memory_space<vmem>>, vector<2x32xf32>
    tpu.vector_store %arg8[%c0_24, %c0_25], %37 {strides = array<i32>} : memref<2x32xf32, #tpu.memory_space<vmem>>, vector<2x32xf32>,
    return
  }
  func.func @transform_0(%arg0: i32) -> (i32, i32, i32) {
    %c0_i32 = arith.constant 0 : i32
    %c0_i32_0 = arith.constant 0 : i32
    %c0_i32_1 = arith.constant 0 : i32
    return %arg0, %c0_i32, %c0_i32_0 : i32, i32, i32
  }
  func.func @transform_1(%arg0: i32) -> (i32, i32) {
    %c0_i32 = arith.constant 0 : i32
    %c0_i32_0 = arith.constant 0 : i32
    return %arg0, %c0_i32 : i32, i32
  }
  func.func @transform_2(%arg0: i32) -> (i32, i32) {
    %c0_i32 = arith.constant 0 : i32
    %c0_i32_0 = arith.constant 0 : i32
    %c0_i32_1 = arith.constant 0 : i32
    return %c0_i32, %c0_i32_0 : i32, i32
  }
  func.func @transform_3(%arg0: i32) -> (i32, i32) {
    %c0_i32 = arith.constant 0 : i32
    %c0_i32_0 = arith.constant 0 : i32
    %c0_i32_1 = arith.constant 0 : i32
    return %c0_i32, %c0_i32_0 : i32, i32
  }
  func.func @transform_4(%arg0: i32) -> (i32, i32) {
    %c0_i32 = arith.constant 0 : i32
    %c0_i32_0 = arith.constant 0 : i32
    %c0_i32_1 = arith.constant 0 : i32
    return %c0_i32, %c0_i32_0 : i32, i32
  }
  func.func @transform_5(%arg0: i32) -> (i32, i32) {
    %c0_i32 = arith.constant 0 : i32
    %c0_i32_0 = arith.constant 0 : i32
    %c0_i32_1 = arith.constant 0 : i32
    return %c0_i32, %c0_i32_0 : i32, i32
  }
  func.func @transform_6(%arg0: i32) -> (i32, i32) {
    %c0_i32 = arith.constant 0 : i32
    %c0_i32_0 = arith.constant 0 : i32
    %c0_i32_1 = arith.constant 0 : i32
    return %c0_i32, %c0_i32_0 : i32, i32
  }
  func.func @transform_7(%arg0: i32) -> (i32, i32) {
    %c0_i32 = arith.constant 0 : i32
    %c0_i32_0 = arith.constant 0 : i32
    return %arg0, %c0_i32 : i32, i32
  }
}

module attributes {stable_mosaic.version = 11 : i64} {
  func.func @_att_flatten_kernel(%arg0: i32, %arg1: memref<2x8x32xf32, #tpu.memory_space<vmem>>, %arg2: memref<2x8xf32, #tpu.memory_space<vmem>>, %arg3: memref<32x128xf32, #tpu.memory_space<vmem>>, %arg4: memref<1x128xf32, #tpu.memory_space<vmem>>, %arg5: memref<1x128xf32, #tpu.memory_space<vmem>>, %arg6: memref<32x32xf32, #tpu.memory_space<vmem>>, %arg7: memref<1x32xf32, #tpu.memory_space<vmem>>, %arg8: memref<2x32xf32, #tpu.memory_space<vmem>>, %arg9: memref<2x8xf32, #tpu.memory_space<vmem>>) attributes {dimension_semantics = [#tpu.dimension_semantics<parallel>], iteration_bounds = array<i64: 1>, scalar_prefetch = 0 : i64, scratch_operands = 1 : i64, tpu.core_type = #tpu.core_type<tc>, window_params = [{transform_indices = @transform_0, window_bounds = array<i64: 2, 8, 32>}, {transform_indices = @transform_1, window_bounds = array<i64: 2, 8>}, {pipeline_mode = #tpu.pipeline_mode<synchronous>, transform_indices = @transform_2, window_bounds = array<i64: 32, 128>}, {pipeline_mode = #tpu.pipeline_mode<synchronous>, transform_indices = @transform_3, window_bounds = array<i64: 1, 128>}, {pipeline_mode = #tpu.pipeline_mode<synchronous>, transform_indices = @transform_4, window_bounds = array<i64: 1, 128>}, {pipeline_mode = #tpu.pipeline_mode<synchronous>, transform_indices = @transform_5, window_bounds = array<i64: 32, 32>}, {pipeline_mode = #tpu.pipeline_mode<synchronous>, transform_indices = @transform_6, window_bounds = array<i64: 1, 32>}, {transform_indices = @transform_7, window_bounds = array<i64: 2, 32>}]} {
    %c0 = arith.constant 0 : index
    %c0_0 = arith.constant 0 : index
    %c0_1 = arith.constant 0 : index
    %0 = vector.load %arg1[%c0, %c0_0, %c0_1] : memref<2x8x32xf32, #tpu.memory_space<vmem>>, vector<2x8x32xf32>
    %c0_2 = arith.constant 0 : index
    %c0_3 = arith.constant 0 : index
    %1 = vector.load %arg3[%c0_2, %c0_3] : memref<32x128xf32, #tpu.memory_space<vmem>>, vector<32x128xf32>
    %c0_4 = arith.constant 0 : index
    %c0_5 = arith.constant 0 : index
    %2 = vector.load %arg4[%c0_4, %c0_5] : memref<1x128xf32, #tpu.memory_space<vmem>>, vector<1x128xf32>
    %c0_6 = arith.constant 0 : index
    %c0_7 = arith.constant 0 : index
    %3 = vector.load %arg5[%c0_6, %c0_7] : memref<1x128xf32, #tpu.memory_space<vmem>>, vector<1x128xf32>
    %4 = vector.shape_cast %0 : vector<2x8x32xf32> to vector<16x32xf32>
    %cst = arith.constant dense<0.000000e+00> : vector<16x128xf32>
    %5 = tpu.matmul %4, %1, %cst {dimension_numbers = #tpu.dot_dimension_numbers<[1], [0], [0], [1], [0, 0, 1, 1], [], []>} : vector<16x32xf32>, vector<32x128xf32>, vector<16x128xf32> -> vector<16x128xf32>
    %6 = vector.broadcast %2 : vector<1x128xf32> to vector<16x128xf32>
    %7 = arith.addf %5, %6 : vector<16x128xf32>
    %cst_8 = arith.constant 0.000000e+00 : f32
    %8 = vector.broadcast %cst_8 : f32 to vector<16x128xf32>
    %9 = arith.maximumf %7, %8 : vector<16x128xf32>
    %10 = vector.shape_cast %9 : vector<16x128xf32> to vector<2x8x128xf32>
    %11 = vector.shape_cast %3 : vector<1x128xf32> to vector<1x1x128xf32>
    %12 = vector.broadcast %11 : vector<1x1x128xf32> to vector<2x8x128xf32>
    %13 = arith.mulf %10, %12 : vector<2x8x128xf32>
    %cst_9 = arith.constant dense<0.000000e+00> : vector<2x8xf32>
    %14 = vector.multi_reduction <add>, %13, %cst_9 [2] : vector<2x8x128xf32> to vector<2x8xf32>
    %c0_10 = arith.constant 0 : index
    %c0_11 = arith.constant 0 : index
    %15 = vector.load %arg9[%c0_10, %c0_11] : memref<2x8xf32, #tpu.memory_space<vmem>>, vector<2x8xf32>
    tpu.vector_store %arg9[%c0_10, %c0_11], %14 {strides = array<i32>} : memref<2x8xf32, #tpu.memory_space<vmem>>, vector<2x8xf32>,
    %c0_12 = arith.constant 0 : index
    %c0_13 = arith.constant 0 : index
    %16 = vector.load %arg9[%c0_12, %c0_13] : memref<2x8xf32, #tpu.memory_space<vmem>>, vector<2x8xf32>
    %c0_14 = arith.constant 0 : index
    %c0_15 = arith.constant 0 : index
    %17 = vector.load %arg2[%c0_14, %c0_15] : memref<2x8xf32, #tpu.memory_space<vmem>>, vector<2x8xf32>
    %18 = arith.addf %16, %17 : vector<2x8xf32>
    %cst_16 = arith.constant dense<0xFF800000> : vector<2xf32>
    %19 = vector.multi_reduction <maximumf>, %18, %cst_16 [1] : vector<2x8xf32> to vector<2xf32>
    %20 = vector.shape_cast %19 : vector<2xf32> to vector<2x1xf32>
    %21 = vector.broadcast %20 : vector<2x1xf32> to vector<2x8xf32>
    %22 = arith.subf %18, %21 : vector<2x8xf32>
    %23 = math.exp %22 : vector<2x8xf32>
    %cst_17 = arith.constant dense<0.000000e+00> : vector<2xf32>
    %24 = vector.multi_reduction <add>, %23, %cst_17 [1] : vector<2x8xf32> to vector<2xf32>
    %25 = vector.shape_cast %24 : vector<2xf32> to vector<2x1xf32>
    %26 = tpu.reciprocal %25 : vector<2x1xf32> -> vector<2x1xf32>
    %27 = vector.broadcast %26 : vector<2x1xf32> to vector<2x8xf32>
    %28 = arith.mulf %23, %27 : vector<2x8xf32>
    %29 = vector.shape_cast %28 : vector<2x8xf32> to vector<2x8x1xf32>
    %30 = vector.broadcast %29 : vector<2x8x1xf32> to vector<2x8x32xf32>
    %31 = arith.mulf %30, %0 : vector<2x8x32xf32>
    %cst_18 = arith.constant dense<0.000000e+00> : vector<2x32xf32>
    %32 = vector.multi_reduction <add>, %31, %cst_18 [1] : vector<2x8x32xf32> to vector<2x32xf32>
    %c0_19 = arith.constant 0 : index
    %c0_20 = arith.constant 0 : index
    %33 = vector.load %arg6[%c0_19, %c0_20] : memref<32x32xf32, #tpu.memory_space<vmem>>, vector<32x32xf32>
    %cst_21 = arith.constant dense<0.000000e+00> : vector<2x32xf32>
    %34 = tpu.matmul %32, %33, %cst_21 {dimension_numbers = #tpu.dot_dimension_numbers<[1], [0], [0], [1], [0, 0, 1, 1], [], []>} : vector<2x32xf32>, vector<32x32xf32>, vector<2x32xf32> -> vector<2x32xf32>
    %c0_22 = arith.constant 0 : index
    %c0_23 = arith.constant 0 : index
    %35 = vector.load %arg7[%c0_22, %c0_23] : memref<1x32xf32, #tpu.memory_space<vmem>>, vector<1x32xf32>
    %36 = vector.broadcast %35 : vector<1x32xf32> to vector<2x32xf32>
    %37 = arith.addf %34, %36 : vector<2x32xf32>
    %c0_24 = arith.constant 0 : index
    %c0_25 = arith.constant 0 : index
    %38 = vector.load %arg8[%c0_24, %c0_25] : memref<2x32xf32, #tpu.memory_space<vmem>>, vector<2x32xf32>
    tpu.vector_store %arg8[%c0_24, %c0_25], %37 {strides = array<i32>} : memref<2x32xf32, #tpu.memory_space<vmem>>, vector<2x32xf32>,
    return
  }
  func.func @transform_0(%arg0: i32) -> (i32, i32, i32) {
    %c0_i32 = arith.constant 0 : i32
    %c0_i32_0 = arith.constant 0 : i32
    %c0_i32_1 = arith.constant 0 : i32
    return %arg0, %c0_i32, %c0_i32_0 : i32, i32, i32
  }
  func.func @transform_1(%arg0: i32) -> (i32, i32) {
    %c0_i32 = arith.constant 0 : i32
    %c0_i32_0 = arith.constant 0 : i32
    return %arg0, %c0_i32 : i32, i32
  }
  func.func @transform_2(%arg0: i32) -> (i32, i32) {
    %c0_i32 = arith.constant 0 : i32
    %c0_i32_0 = arith.constant 0 : i32
    %c0_i32_1 = arith.constant 0 : i32
    return %c0_i32, %c0_i32_0 : i32, i32
  }
  func.func @transform_3(%arg0: i32) -> (i32, i32) {
    %c0_i32 = arith.constant 0 : i32
    %c0_i32_0 = arith.constant 0 : i32
    %c0_i32_1 = arith.constant 0 : i32
    return %c0_i32, %c0_i32_0 : i32, i32
  }
  func.func @transform_4(%arg0: i32) -> (i32, i32) {
    %c0_i32 = arith.constant 0 : i32
    %c0_i32_0 = arith.constant 0 : i32
    %c0_i32_1 = arith.constant 0 : i32
    return %c0_i32, %c0_i32_0 : i32, i32
  }
  func.func @transform_5(%arg0: i32) -> (i32, i32) {
    %c0_i32 = arith.constant 0 : i32
    %c0_i32_0 = arith.constant 0 : i32
    %c0_i32_1 = arith.constant 0 : i32
    return %c0_i32, %c0_i32_0 : i32, i32
  }
  func.func @transform_6(%arg0: i32) -> (i32, i32) {
    %c0_i32 = arith.constant 0 : i32
    %c0_i32_0 = arith.constant 0 : i32
    %c0_i32_1 = arith.constant 0 : i32
    return %c0_i32, %c0_i32_0 : i32, i32
  }
  func.func @transform_7(%arg0: i32) -> (i32, i32) {
    %c0_i32 = arith.constant 0 : i32
    %c0_i32_0 = arith.constant 0 : i32
    return %arg0, %c0_i32 : i32, i32
  }
}

</mosaic_0001>

<bundles_post_ra>
// kernel: tpu_custom_call.1
= control target key start
LH: loop header
LB: loop body
LE: loop exit
PB: predicated region body
PF: predicated region fallthrough
CT: control target
= control target key end

     0   :  { %12 = vsyncpa [#allocation4], 0  ;;  %s643_s0 = inlined_call_operand.hbm [shape: f32[2,8,32], index: 0, kind: input, shape index: {}]   ;;  %s644_s1 = inlined_call_operand.vmem [shape: f32[2,8], index: 1, kind: input, shape index: {}]   ;;  %s645_s2 = inlined_call_operand.hbm [shape: f32[32,128], index: 2, kind: input, shape index: {}]   ;;  %s646_s3 = inlined_call_operand.vmem [shape: f32[1,128], index: 3, kind: input, shape index: {}]   ;;  %s647_s4 = inlined_call_operand.vmem [shape: f32[1,128], index: 4, kind: input, shape index: {}]   ;;  %s648_s5 = inlined_call_operand.hbm [shape: f32[32,32], index: 5, kind: input, shape index: {}]   ;;  %s649_s6 = inlined_call_operand.vmem [shape: f32[1,32], index: 6, kind: input, shape index: {}]   ;;  %s650_s7 = inlined_call_operand.hbm [shape: f32[2,32], index: 7, kind: output, shape index: {}]  }
   0x1   :  { %13 = vsyncpa [#allocation7], 0 }
   0x2   :  { %14 = vsyncpa [#allocation5], 0  ;;  %s503_s24 = smov [#allocation6]   ;;  %s504_s26 = smov [#allocation3]  }
   0x3   :  { %s34_s25 = sshll.u32 %s503_s24, 4  ;;  %s20_s27 = sshll.u32 %s504_s26, 4  ;;  %s35_s25 = int_to_ptr.vmem [resolvable:$true] %s34_s25  ;;  %s552_s27 = int_to_ptr.vmem [resolvable:$true] %s20_s27 }
   0x4   :  { %s409_s30 = scalar_lea.hbm %s645_s2, 512 }
   0x5   :  { %p410_p0 = scmp.ne.s32.totalorder %s645_s2, %s409_s30  ;;  %p413_p1 = scmp.lt.u32.totalorder %s409_s30, %s645_s2 }
   0x7   :  { %p415_p2 = pnand %p413_p1, %p410_p0 }
   0x9   :  { %418 = shalt.err (!%p415_p2)
}
   0xa   :  { %s419_s12 = scalar_lea.vmem %s35_s25, 512  ;;  %p424_p4 = scmp.lt.s32.totalorder %s35_s25, %s35_s25 }
   0xb   :  { %p420_p3 = scmp.ne.s32.totalorder %s35_s25, %s419_s12  ;;  %p425_p5 = scmp.lt.s32.totalorder %s419_s12, %s419_s12 }
   0xd   :  { %p426_p6 = por %p425_p5, %p424_p4 }
   0xf   :  { %p427_p7 = pnand %p426_p6, %p420_p3 }
  0x11   :  { %430 = shalt.err (!%p427_p7)
}
  0x12   :  { %s505_s13 = smov 128   ;;  %s506_s14 = smov 8  }
  0x13   :  { %40 = dma.hbm_to_vmem [thread:$0]  %s645_s2, 512, %s35_s25, [#allocation7], %s505_s13, %s505_s13, %s506_s14  }
  0x14   :  { %s431_s19 = scalar_lea.hbm %s643_s0, 256 }
  0x15   :  { %p432_p8 = scmp.ne.s32.totalorder %s643_s0, %s431_s19  ;;  %p435_p9 = scmp.lt.u32.totalorder %s431_s19, %s643_s0 }
  0x17   :  { %p437_p10 = pnand %p435_p9, %p432_p8 }
  0x19   :  { %440 = shalt.err (!%p437_p10)
}
  0x1a   :  { %s441_s24 = scalar_lea.vmem %s552_s27, 256  ;;  %p446_p12 = scmp.lt.s32.totalorder %s552_s27, %s552_s27 }
  0x1b   :  { %p442_p11 = scmp.ne.s32.totalorder %s552_s27, %s441_s24  ;;  %p447_p13 = scmp.lt.s32.totalorder %s441_s24, %s441_s24 }
  0x1d   :  { %p448_p0 = por %p447_p13, %p446_p12 }
  0x1f   :  { %p449_p1 = pnand %p448_p0, %p442_p11 }
  0x21   :  { %452 = shalt.err (!%p449_p1)
}
  0x22   :  { %26 = dma.hbm_to_vmem [thread:$0]  %s643_s0, 256, %s552_s27, [#allocation4], %s505_s13, %s505_s13, %s506_s14  }
  0x23   :  { %s507_s26 = smov [#allocation8]   ;;  %s453_s8 = scalar_lea.hbm %s648_s5, 512 }
  0x24   :  { %s50_s28 = sshll.u32 %s507_s26, 4  ;;  %p454_p2 = scmp.ne.s32.totalorder %s648_s5, %s453_s8  ;;  %s51_s28 = int_to_ptr.vmem [resolvable:$true] %s50_s28 }
  0x25   :  { %p457_p3 = scmp.lt.u32.totalorder %s453_s8, %s648_s5 }
  0x27   :  { %p459_p4 = pnand %p457_p3, %p454_p2 }
  0x29   :  { %462 = shalt.err (!%p459_p4)
}
  0x2a   :  { %s463_s15 = scalar_lea.vmem %s51_s28, 512  ;;  %p468_p6 = scmp.lt.s32.totalorder %s51_s28, %s51_s28 }
  0x2b   :  { %p464_p5 = scmp.ne.s32.totalorder %s51_s28, %s463_s15  ;;  %p469_p7 = scmp.lt.s32.totalorder %s463_s15, %s463_s15 }
  0x2d   :  { %p470_p8 = por %p469_p7, %p468_p6 }
  0x2f   :  { %p471_p9 = pnand %p470_p8, %p464_p5 }
  0x31   :  { %474 = shalt.err (!%p471_p9)
}
  0x32   :  { %56 = dma.hbm_to_vmem [thread:$0]  %s648_s5, 512, %s51_s28, [#allocation7], %s505_s13, %s505_s13, %s506_s14  }
  0x33   :  { %497 = dma.done.wait [#allocation4], 256  }
  0x34   :  { %498 = vsyncadd [#allocation4], 4294967040 }
  0x35   :  { %499 = dma.done.wait [#allocation7], 1024  }
  0x36   :  { %500 = vsyncadd [#allocation7], 4294966272  ;;  %vm82_vm0 = vcmask 261120   ;;  %v70_v0 = vld [vmem:[#allocation6] sm:$0xff]  ;;  %v71_v1 = vld [vmem:[#allocation6 + $0x8] sm:$0xff]  ;;  %v180_v18 = vlaneseq  ;;  %vm190_vm1 = vcmask 1041409  }
  0x37   :  { %v72_v2 = vld [vmem:[#allocation6 + $0x10] sm:$0xff]  ;;  %v382_v3 = vpack.c.bf16 %v71_v1, %v70_v0  ;;  %v73_v4 = vld [vmem:[#allocation6 + $0x18] sm:$0xff]  ;;  %v343_v8 = vld [vmem:[%s646_s3] ss:$0 sm:$0xff]  ;;  %vm193_vm2 = vcmask 58368   ;;  %v508_v43 = vmov 0.0|0.0  }
  0x38   :  { %v604_v5 = vld [vmem:[#allocation3] sm:$0xff]  ;;  %v386_v6 = vpack.c.bf16 %v73_v4, %v72_v2  ;;  %v608_v7 = vld [vmem:[#allocation3 + $0x8] sm:$0xff]  ;;  %v346_v13 = vld [vmem:[%s647_s4] ss:$0 sm:$0xff]  ;;  %v181_v19 = vand.u32 127, %v180_v18  ;;  %v183_v20 = vshrl.u32 %v180_v18, 7  ;;  %390 = vmatprep.subr.bf16.mxu1 %v508_v43 }
  0x39   :  { %368 = vmatprep.mubr.msk.f32.mxu0 %vm82_vm0, %v604_v5  ;;  %383 = vmatprep.subr.bf16.mxu0 %v382_v3  ;;  %v196_v27 = vld [vmem:[%s644_s1] sm:$0x3]  ;;  %v239_v37 = vld [vmem:[#allocation8] sm:$0xff]  ;;  %v241_v45 = vld [vmem:[#allocation8 + $0x10] sm:$0xff]  ;;  %vm509_vm3 = vmmov 0   ;;  %v510_v50 = vmov 0.0  }
  0x3a   :  { %385 = vmatpush3.bf16.msra.mxu0 %v382_v3  ;;  %v184_v22 = vsub.s32 %v181_v19, %v183_v20  ;;  %v240_v38 = vld [vmem:[#allocation8 + $0x8] sm:$0xff]  ;;  %v218_v39 = vsub.s32 1, %v183_v20  ;;  %v211_v40 = vsub.s32 0, %v183_v20  ;;  %v242_v46 = vld [vmem:[#allocation8 + $0x18] sm:$0xff]  ;;  %379 = vmatprep.mubr.msk.f32.mxu1 %vm509_vm3, %v510_v50  ;;  %s511_s18 = smov [#allocation9]   ;;  %vm325_vm4 = vcmask 254976  }
  0x3b   :  { %387 = vmatprep.subr.bf16.mxu0 %v386_v6  ;;  %v391_v41 = vpack.c.bf16 %v240_v38, %v239_v37  ;;  %v394_v49 = vpack.c.bf16 %v242_v46, %v241_v45  ;;  %s333_s19 = sshll.u32 %s511_s18, 4  ;;  %s334_s19 = int_to_ptr.vmem [resolvable:$true] %s333_s19 }
  0x3c   :  { %s475_s20 = scalar_lea.vmem %s334_s19, 32  ;;  %p480_p11 = scmp.lt.s32.totalorder %s334_s19, %s334_s19 }
  0x3d   :  { %392 = vmatpush3.bf16.msra.mxu1 %v391_v41  ;;  %p476_p10 = scmp.ne.s32.totalorder %s334_s19, %s475_s20  ;;  %p481_p12 = scmp.lt.s32.totalorder %s475_s20, %s475_s20 }
  0x3e   :  { %389 = vmatpush3.bf16.msra.mxu0 %v386_v6  ;;  %393 = vmatprep.subr.bf16.mxu1 %v508_v43 }
  0x3f   :  { %p482_p13 = por %p481_p12, %p480_p11 }
  0x41   :  { %369 = vmatmul.mubr.msk.f32.vlgmr.msra.gmra.mrb[0].mxu0 %vm82_vm0, %v608_v7  ;;  %395 = vmatpush3.bf16.msra.mxu1 %v394_v49  ;;  %p483_p0 = pnand %p482_p13, %p476_p10 }
 0x114   :  { %v370_v9 = vpop.f32.mrb[0].mxu0 }
 0x115   :  { %v155_v10 = vpop.f32.mrb[1].mxu0  ;;  %v161_v11 = vadd.f32 %v370_v9, %v343_v8 }
 0x116   :  { %v156_v12 = vadd.f32 %v343_v8, %v155_v10 }
 0x117   :  { %v165_v15 = vmax.f32 %v161_v11, 0.0 }
 0x118   :  { %v164_v14 = vmax.f32 %v156_v12, 0.0 }
 0x119   :  { %v173_v17 = vmul.f32 %v346_v13, %v165_v15 }
 0x11a   :  { %v172_v16 = vmul.f32 %v346_v13, %v164_v14 }
 0x11c   :  { %174 = vadd.xlane.f32.xlu0 %v172_v16 }
 0x120   :  { %176 = vadd.xlane.f32.xlu0 %v173_v17 }
 0x1a9   :  { %v175_v21 = vpop.xlane.xlu0 %174 }
 0x1aa   :  { %v185_v24 = vrot.slane %v175_v21, %v184_v22 }
 0x1ad   :  { %v177_v23 = vpop.xlane.xlu0 %176 }
 0x1ae   :  { %v189_v25 = vrot.slane %v177_v23, %v184_v22 }
 0x1b0   :  { %v191_v26 = vsel %vm190_vm1, %v189_v25, %v185_v24 }
 0x1b1   :  { %194 = vst.msk [vmem:[#allocation2] sm:$0x3] %vm193_vm2, %v191_v26 }
 0x1b8   :  { %v195_v28 = vld [vmem:[#allocation2] sm:$0x3] }
 0x1b9   :  { %v197_v29 = vadd.f32 %v196_v27, %v195_v28 }
 0x1bb   :  { %v198_v30 = vsel %vm193_vm2, %v197_v29, -inf }
 0x1bc   :  { %199 = vmax.xlane.f32.xlu1 %v198_v30 }
 0x249   :  { %v200_v31 = vpop.xlane.xlu1 %199 }
 0x24a   :  { %v201_v32 = vsub.f32 %v197_v29, %v200_v31 }
 0x24c   :  { %v202_v33 = vmul.f32 1.442695, %v201_v32 }
 0x24e   :  { %405 = vpow2.f32 %v202_v33 }
 0x258   :  { %v406_v34 = vpop.eup %405 }
 0x259   :  { %v204_v35 = vsel %vm193_vm2, %v406_v34, 0.0 }
 0x25a   :  { %205 = vadd.xlane.f32.xlu1 %v204_v35 }
 0x2e7   :  { %v206_v36 = vpop.xlane.xlu1 %205 }
 0x2e8   :  { %407 = vrcp.f32 %v206_v36 }
 0x2f2   :  { %v408_v42 = vpop.eup %407 }
 0x2f3   :  { %v208_v44 = vmul.f32 %v408_v42, %v406_v34 }
 0x2f5   :  { %v219_v47 = vrot.slane %v208_v44, %v218_v39  ;;  %v212_v48 = vrot.slane %v208_v44, %v211_v40 }
 0x2f7   :  { %221 = vbcast.lane.b32.xlu1 %v219_v47, 256  ;;  %214 = vbcast.lane.b32.xlu0 %v212_v48, 256 }
 0x369   :  { %v222_v51 = vpop.permute.xlu1 %221  ;;  %v215_v52 = vpop.permute.xlu0 %214 }
 0x36a   :  { %v224_v53 = vmul.f32 %v222_v51, %v608_v7  ;;  %v223_v54 = vmul.f32 %v215_v52, %v604_v5  ;;  %v347_v5 = vld [vmem:[%s649_s6] ss:$0 sm:$0xff] }
 0x36c   :  { %v232_v55 = vsel %vm82_vm0, %v224_v53, 0.0  ;;  %v225_v56 = vsel %vm82_vm0, %v223_v54, 0.0 }
 0x36d   :  { %v233_v57 = vrot.slane %v232_v55, 4  ;;  %v226_v58 = vrot.slane %v225_v56, 4 }
 0x36f   :  { %v234_v59 = vadd.f32 %v233_v57, %v232_v55  ;;  %v227_v60 = vadd.f32 %v226_v58, %v225_v56 }
 0x371   :  { %v235_v61 = vrot.slane %v234_v59, 2  ;;  %v228_v62 = vrot.slane %v227_v60, 2 }
 0x373   :  { %v236_v63 = vadd.f32 %v235_v61, %v234_v59  ;;  %v229_v0 = vadd.f32 %v228_v62, %v227_v60 }
 0x375   :  { %v237_v1 = vrot.slane %v236_v63, 1  ;;  %v230_v2 = vrot.slane %v229_v0, 1 }
 0x377   :  { %v238_v3 = vadd.f32 %v237_v1, %v236_v63  ;;  %v231_v4 = vadd.f32 %v230_v2, %v229_v0 }
 0x379   :  { %v252_v6 = vsel %vm190_vm1, %v238_v3, %v231_v4 }
 0x37a   :  { %380 = vmatmul.mubr.msk.f32.vlgmr.msra.gmra.mrb[0].mxu1 %vm82_vm0, %v252_v6 }
 0x44d   :  { %v321_v7 = vpop.f32.mrb[0].mxu1 }
 0x44e   :  { %v322_v8 = vadd.f32 %v347_v5, %v321_v7  ;;  %v381_v9 = vpop.f32.mrb[1].mxu1 }
 0x450   :  { %326 = vst.msk [vmem:[#allocation9] sm:$0x3] %vm325_vm4, %v322_v8 }
 0x451   :  { %486 = shalt.err (!%p483_p0)
}
 0x452   :  { %s487_s23 = scalar_lea.hbm %s650_s7, 32 }
 0x453   :  { %p488_p1 = scmp.ne.s32.totalorder %s650_s7, %s487_s23  ;;  %p491_p2 = scmp.lt.u32.totalorder %s487_s23, %s650_s7 }
 0x455   :  { %p493_p3 = pnand %p491_p2, %p488_p1 }
 0x457   :  { %496 = shalt.err (!%p493_p3)
}
 0x458   :  { %336 = dma.vmem_to_hbm [thread:$0]  %s334_s19, 32, %s650_s7, [#allocation5]  }
 0x459   :  { %501 = dma.done.wait [#allocation5], 32  }
 0x45a   :  { %502 = vsyncadd [#allocation5], 4294967264 }
 0x45b   :  { %340 = vsyncpa [#allocation4], 1 }
 0x45c   :  { %341 = vsyncpa [#allocation7], 1 }
 0x45d   :  { %342 = vsyncpa [#allocation5], 1 }

// kernel: tpu_custom_call.1
= control target key start
LH: loop header
LB: loop body
LE: loop exit
PB: predicated region body
PF: predicated region fallthrough
CT: control target
= control target key end

     0   :  { %12 = vsyncpa [#allocation4], 0  ;;  %s643_s0 = inlined_call_operand.hbm [shape: f32[2,8,32], index: 0, kind: input, shape index: {}]   ;;  %s644_s1 = inlined_call_operand.vmem [shape: f32[2,8], index: 1, kind: input, shape index: {}]   ;;  %s645_s2 = inlined_call_operand.hbm [shape: f32[32,128], index: 2, kind: input, shape index: {}]   ;;  %s646_s3 = inlined_call_operand.vmem [shape: f32[1,128], index: 3, kind: input, shape index: {}]   ;;  %s647_s4 = inlined_call_operand.vmem [shape: f32[1,128], index: 4, kind: input, shape index: {}]   ;;  %s648_s5 = inlined_call_operand.hbm [shape: f32[32,32], index: 5, kind: input, shape index: {}]   ;;  %s649_s6 = inlined_call_operand.vmem [shape: f32[1,32], index: 6, kind: input, shape index: {}]   ;;  %s650_s7 = inlined_call_operand.hbm [shape: f32[2,32], index: 7, kind: output, shape index: {}]  }
   0x1   :  { %13 = vsyncpa [#allocation7], 0 }
   0x2   :  { %14 = vsyncpa [#allocation5], 0  ;;  %s503_s24 = smov [#allocation6]   ;;  %s504_s26 = smov [#allocation3]  }
   0x3   :  { %s34_s25 = sshll.u32 %s503_s24, 4  ;;  %s20_s27 = sshll.u32 %s504_s26, 4  ;;  %s35_s25 = int_to_ptr.vmem [resolvable:$true] %s34_s25  ;;  %s552_s27 = int_to_ptr.vmem [resolvable:$true] %s20_s27 }
   0x4   :  { %s409_s30 = scalar_lea.hbm %s645_s2, 512 }
   0x5   :  { %p410_p0 = scmp.ne.s32.totalorder %s645_s2, %s409_s30  ;;  %p413_p1 = scmp.lt.u32.totalorder %s409_s30, %s645_s2 }
   0x7   :  { %p415_p2 = pnand %p413_p1, %p410_p0 }
   0x9   :  { %418 = shalt.err (!%p415_p2)
}
   0xa   :  { %s419_s12 = scalar_lea.vmem %s35_s25, 512  ;;  %p424_p4 = scmp.lt.s32.totalorder %s35_s25, %s35_s25 }
   0xb   :  { %p420_p3 = scmp.ne.s32.totalorder %s35_s25, %s419_s12  ;;  %p425_p5 = scmp.lt.s32.totalorder %s419_s12, %s419_s12 }
   0xd   :  { %p426_p6 = por %p425_p5, %p424_p4 }
   0xf   :  { %p427_p7 = pnand %p426_p6, %p420_p3 }
  0x11   :  { %430 = shalt.err (!%p427_p7)
}
  0x12   :  { %s505_s13 = smov 128   ;;  %s506_s14 = smov 8  }
  0x13   :  { %40 = dma.hbm_to_vmem [thread:$0]  %s645_s2, 512, %s35_s25, [#allocation7], %s505_s13, %s505_s13, %s506_s14  }
  0x14   :  { %s431_s19 = scalar_lea.hbm %s643_s0, 256 }
  0x15   :  { %p432_p8 = scmp.ne.s32.totalorder %s643_s0, %s431_s19  ;;  %p435_p9 = scmp.lt.u32.totalorder %s431_s19, %s643_s0 }
  0x17   :  { %p437_p10 = pnand %p435_p9, %p432_p8 }
  0x19   :  { %440 = shalt.err (!%p437_p10)
}
  0x1a   :  { %s441_s24 = scalar_lea.vmem %s552_s27, 256  ;;  %p446_p12 = scmp.lt.s32.totalorder %s552_s27, %s552_s27 }
  0x1b   :  { %p442_p11 = scmp.ne.s32.totalorder %s552_s27, %s441_s24  ;;  %p447_p13 = scmp.lt.s32.totalorder %s441_s24, %s441_s24 }
  0x1d   :  { %p448_p0 = por %p447_p13, %p446_p12 }
  0x1f   :  { %p449_p1 = pnand %p448_p0, %p442_p11 }
  0x21   :  { %452 = shalt.err (!%p449_p1)
}
  0x22   :  { %26 = dma.hbm_to_vmem [thread:$0]  %s643_s0, 256, %s552_s27, [#allocation4], %s505_s13, %s505_s13, %s506_s14  }
  0x23   :  { %s507_s26 = smov [#allocation8]   ;;  %s453_s8 = scalar_lea.hbm %s648_s5, 512 }
  0x24   :  { %s50_s28 = sshll.u32 %s507_s26, 4  ;;  %p454_p2 = scmp.ne.s32.totalorder %s648_s5, %s453_s8  ;;  %s51_s28 = int_to_ptr.vmem [resolvable:$true] %s50_s28 }
  0x25   :  { %p457_p3 = scmp.lt.u32.totalorder %s453_s8, %s648_s5 }
  0x27   :  { %p459_p4 = pnand %p457_p3, %p454_p2 }
  0x29   :  { %462 = shalt.err (!%p459_p4)
}
  0x2a   :  { %s463_s15 = scalar_lea.vmem %s51_s28, 512  ;;  %p468_p6 = scmp.lt.s32.totalorder %s51_s28, %s51_s28 }
  0x2b   :  { %p464_p5 = scmp.ne.s32.totalorder %s51_s28, %s463_s15  ;;  %p469_p7 = scmp.lt.s32.totalorder %s463_s15, %s463_s15 }
  0x2d   :  { %p470_p8 = por %p469_p7, %p468_p6 }
  0x2f   :  { %p471_p9 = pnand %p470_p8, %p464_p5 }
  0x31   :  { %474 = shalt.err (!%p471_p9)
}
  0x32   :  { %56 = dma.hbm_to_vmem [thread:$0]  %s648_s5, 512, %s51_s28, [#allocation7], %s505_s13, %s505_s13, %s506_s14  }
  0x33   :  { %497 = dma.done.wait [#allocation4], 256  }
  0x34   :  { %498 = vsyncadd [#allocation4], 4294967040 }
  0x35   :  { %499 = dma.done.wait [#allocation7], 1024  }
  0x36   :  { %500 = vsyncadd [#allocation7], 4294966272  ;;  %vm82_vm0 = vcmask 261120   ;;  %v70_v0 = vld [vmem:[#allocation6] sm:$0xff]  ;;  %v71_v1 = vld [vmem:[#allocation6 + $0x8] sm:$0xff]  ;;  %v180_v18 = vlaneseq  ;;  %vm190_vm1 = vcmask 1041409  }
  0x37   :  { %v72_v2 = vld [vmem:[#allocation6 + $0x10] sm:$0xff]  ;;  %v382_v3 = vpack.c.bf16 %v71_v1, %v70_v0  ;;  %v73_v4 = vld [vmem:[#allocation6 + $0x18] sm:$0xff]  ;;  %v343_v8 = vld [vmem:[%s646_s3] ss:$0 sm:$0xff]  ;;  %vm193_vm2 = vcmask 58368   ;;  %v508_v43 = vmov 0.0|0.0  }
  0x38   :  { %v604_v5 = vld [vmem:[#allocation3] sm:$0xff]  ;;  %v386_v6 = vpack.c.bf16 %v73_v4, %v72_v2  ;;  %v608_v7 = vld [vmem:[#allocation3 + $0x8] sm:$0xff]  ;;  %v346_v13 = vld [vmem:[%s647_s4] ss:$0 sm:$0xff]  ;;  %v181_v19 = vand.u32 127, %v180_v18  ;;  %v183_v20 = vshrl.u32 %v180_v18, 7  ;;  %390 = vmatprep.subr.bf16.mxu1 %v508_v43 }
  0x39   :  { %368 = vmatprep.mubr.msk.f32.mxu0 %vm82_vm0, %v604_v5  ;;  %383 = vmatprep.subr.bf16.mxu0 %v382_v3  ;;  %v196_v27 = vld [vmem:[%s644_s1] sm:$0x3]  ;;  %v239_v37 = vld [vmem:[#allocation8] sm:$0xff]  ;;  %v241_v45 = vld [vmem:[#allocation8 + $0x10] sm:$0xff]  ;;  %vm509_vm3 = vmmov 0   ;;  %v510_v50 = vmov 0.0  }
  0x3a   :  { %385 = vmatpush3.bf16.msra.mxu0 %v382_v3  ;;  %v184_v22 = vsub.s32 %v181_v19, %v183_v20  ;;  %v240_v38 = vld [vmem:[#allocation8 + $0x8] sm:$0xff]  ;;  %v218_v39 = vsub.s32 1, %v183_v20  ;;  %v211_v40 = vsub.s32 0, %v183_v20  ;;  %v242_v46 = vld [vmem:[#allocation8 + $0x18] sm:$0xff]  ;;  %379 = vmatprep.mubr.msk.f32.mxu1 %vm509_vm3, %v510_v50  ;;  %s511_s18 = smov [#allocation9]   ;;  %vm325_vm4 = vcmask 254976  }
  0x3b   :  { %387 = vmatprep.subr.bf16.mxu0 %v386_v6  ;;  %v391_v41 = vpack.c.bf16 %v240_v38, %v239_v37  ;;  %v394_v49 = vpack.c.bf16 %v242_v46, %v241_v45  ;;  %s333_s19 = sshll.u32 %s511_s18, 4  ;;  %s334_s19 = int_to_ptr.vmem [resolvable:$true] %s333_s19 }
  0x3c   :  { %s475_s20 = scalar_lea.vmem %s334_s19, 32  ;;  %p480_p11 = scmp.lt.s32.totalorder %s334_s19, %s334_s19 }
  0x3d   :  { %392 = vmatpush3.bf16.msra.mxu1 %v391_v41  ;;  %p476_p10 = scmp.ne.s32.totalorder %s334_s19, %s475_s20  ;;  %p481_p12 = scmp.lt.s32.totalorder %s475_s20, %s475_s20 }
  0x3e   :  { %389 = vmatpush3.bf16.msra.mxu0 %v386_v6  ;;  %393 = vmatprep.subr.bf16.mxu1 %v508_v43 }
  0x3f   :  { %p482_p13 = por %p481_p12, %p480_p11 }
  0x41   :  { %369 = vmatmul.mubr.msk.f32.vlgmr.msra.gmra.mrb[0].mxu0 %vm82_vm0, %v608_v7  ;;  %395 = vmatpush3.bf16.msra.mxu1 %v394_v49  ;;  %p483_p0 = pnand %p482_p13, %p476_p10 }
 0x114   :  { %v370_v9 = vpop.f32.mrb[0].mxu0 }
 0x115   :  { %v155_v10 = vpop.f32.mrb[1].mxu0  ;;  %v161_v11 = vadd.f32 %v370_v9, %v343_v8 }
 0x116   :  { %v156_v12 = vadd.f32 %v343_v8, %v155_v10 }
 0x117   :  { %v165_v15 = vmax.f32 %v161_v11, 0.0 }
 0x118   :  { %v164_v14 = vmax.f32 %v156_v12, 0.0 }
 0x119   :  { %v173_v17 = vmul.f32 %v346_v13, %v165_v15 }
 0x11a   :  { %v172_v16 = vmul.f32 %v346_v13, %v164_v14 }
 0x11c   :  { %174 = vadd.xlane.f32.xlu0 %v172_v16 }
 0x120   :  { %176 = vadd.xlane.f32.xlu0 %v173_v17 }
 0x1a9   :  { %v175_v21 = vpop.xlane.xlu0 %174 }
 0x1aa   :  { %v185_v24 = vrot.slane %v175_v21, %v184_v22 }
 0x1ad   :  { %v177_v23 = vpop.xlane.xlu0 %176 }
 0x1ae   :  { %v189_v25 = vrot.slane %v177_v23, %v184_v22 }
 0x1b0   :  { %v191_v26 = vsel %vm190_vm1, %v189_v25, %v185_v24 }
 0x1b1   :  { %194 = vst.msk [vmem:[#allocation2] sm:$0x3] %vm193_vm2, %v191_v26 }
 0x1b8   :  { %v195_v28 = vld [vmem:[#allocation2] sm:$0x3] }
 0x1b9   :  { %v197_v29 = vadd.f32 %v196_v27, %v195_v28 }
 0x1bb   :  { %v198_v30 = vsel %vm193_vm2, %v197_v29, -inf }
 0x1bc   :  { %199 = vmax.xlane.f32.xlu1 %v198_v30 }
 0x249   :  { %v200_v31 = vpop.xlane.xlu1 %199 }
 0x24a   :  { %v201_v32 = vsub.f32 %v197_v29, %v200_v31 }
 0x24c   :  { %v202_v33 = vmul.f32 1.442695, %v201_v32 }
 0x24e   :  { %405 = vpow2.f32 %v202_v33 }
 0x258   :  { %v406_v34 = vpop.eup %405 }
 0x259   :  { %v204_v35 = vsel %vm193_vm2, %v406_v34, 0.0 }
 0x25a   :  { %205 = vadd.xlane.f32.xlu1 %v204_v35 }
 0x2e7   :  { %v206_v36 = vpop.xlane.xlu1 %205 }
 0x2e8   :  { %407 = vrcp.f32 %v206_v36 }
 0x2f2   :  { %v408_v42 = vpop.eup %407 }
 0x2f3   :  { %v208_v44 = vmul.f32 %v408_v42, %v406_v34 }
 0x2f5   :  { %v219_v47 = vrot.slane %v208_v44, %v218_v39  ;;  %v212_v48 = vrot.slane %v208_v44, %v211_v40 }
 0x2f7   :  { %221 = vbcast.lane.b32.xlu1 %v219_v47, 256  ;;  %214 = vbcast.lane.b32.xlu0 %v212_v48, 256 }
 0x369   :  { %v222_v51 = vpop.permute.xlu1 %221  ;;  %v215_v52 = vpop.permute.xlu0 %214 }
 0x36a   :  { %v224_v53 = vmul.f32 %v222_v51, %v608_v7  ;;  %v223_v54 = vmul.f32 %v215_v52, %v604_v5  ;;  %v347_v5 = vld [vmem:[%s649_s6] ss:$0 sm:$0xff] }
 0x36c   :  { %v232_v55 = vsel %vm82_vm0, %v224_v53, 0.0  ;;  %v225_v56 = vsel %vm82_vm0, %v223_v54, 0.0 }
 0x36d   :  { %v233_v57 = vrot.slane %v232_v55, 4  ;;  %v226_v58 = vrot.slane %v225_v56, 4 }
 0x36f   :  { %v234_v59 = vadd.f32 %v233_v57, %v232_v55  ;;  %v227_v60 = vadd.f32 %v226_v58, %v225_v56 }
 0x371   :  { %v235_v61 = vrot.slane %v234_v59, 2  ;;  %v228_v62 = vrot.slane %v227_v60, 2 }
 0x373   :  { %v236_v63 = vadd.f32 %v235_v61, %v234_v59  ;;  %v229_v0 = vadd.f32 %v228_v62, %v227_v60 }
 0x375   :  { %v237_v1 = vrot.slane %v236_v63, 1  ;;  %v230_v2 = vrot.slane %v229_v0, 1 }
 0x377   :  { %v238_v3 = vadd.f32 %v237_v1, %v236_v63  ;;  %v231_v4 = vadd.f32 %v230_v2, %v229_v0 }
 0x379   :  { %v252_v6 = vsel %vm190_vm1, %v238_v3, %v231_v4 }
 0x37a   :  { %380 = vmatmul.mubr.msk.f32.vlgmr.msra.gmra.mrb[0].mxu1 %vm82_vm0, %v252_v6 }
 0x44d   :  { %v321_v7 = vpop.f32.mrb[0].mxu1 }
 0x44e   :  { %v322_v8 = vadd.f32 %v347_v5, %v321_v7  ;;  %v381_v9 = vpop.f32.mrb[1].mxu1 }
 0x450   :  { %326 = vst.msk [vmem:[#allocation9] sm:$0x3] %vm325_vm4, %v322_v8 }
 0x451   :  { %486 = shalt.err (!%p483_p0)
}
 0x452   :  { %s487_s23 = scalar_lea.hbm %s650_s7, 32 }
 0x453   :  { %p488_p1 = scmp.ne.s32.totalorder %s650_s7, %s487_s23  ;;  %p491_p2 = scmp.lt.u32.totalorder %s487_s23, %s650_s7 }
 0x455   :  { %p493_p3 = pnand %p491_p2, %p488_p1 }
 0x457   :  { %496 = shalt.err (!%p493_p3)
}
 0x458   :  { %336 = dma.vmem_to_hbm [thread:$0]  %s334_s19, 32, %s650_s7, [#allocation5]  }
 0x459   :  { %501 = dma.done.wait [#allocation5], 32  }
 0x45a   :  { %502 = vsyncadd [#allocation5], 4294967264 }
 0x45b   :  { %340 = vsyncpa [#allocation4], 1 }
 0x45c   :  { %341 = vsyncpa [#allocation7], 1 }
 0x45d   :  { %342 = vsyncpa [#allocation5], 1 }

</bundles_post_ra>
